<compile_context>
chip_gen: v7x
topology: tpu7x:2x2x1
jax: 0.10.0
libtpu: 0.0.40
codegen_flags: <defaults>
</compile_context>

<pallas_src>
import functools
import math

import jax
import jax.numpy as jnp
from jax.experimental import pallas as pl
from jax.experimental.pallas import tpu as pltpu

_VMEM_LIMIT = 48 * 1024 * 1024  # explicit scoped-VMEM budget (safe on v5e/v6e/v7x)


# ------------------------------- helpers ------------------------------------

def _rup(v, m):
    return ((v + m - 1) // m) * m


def _pick_tile(dim, align, cap):
    """Tile size and padded extent.

    If dim <= cap we use the full dim as a single block (full-extent blocks are
    exempt from the (8,128) divisibility rule), so no padding is needed.
    Otherwise pad to a multiple of `align` and pick the largest divisor <= cap.
    """
    if dim <= cap:
        return dim, dim
    d = _rup(dim, align)
    t = (cap // align) * align
    while d % t:
        t -= align
    return t, d


def _bf16(a):
    return a if a.dtype == jnp.bfloat16 else a.astype(jnp.bfloat16)


def _pad2(a, rows, cols):
    pr, pc = rows - a.shape[0], cols - a.shape[1]
    if pr == 0 and pc == 0:
        return a
    return jnp.pad(a, ((0, pr), (0, pc)))


def _gelu_tanh(x):
    # nn.GELU(approximate='tanh')
    c = math.sqrt(2.0 / math.pi)
    return 0.5 * x * (1.0 + jnp.tanh(c * (x + 0.044715 * x * x * x)))


# ------------------- tiled matmul (+ bias / gelu / residual) ----------------

def _matmul_kernel(*refs, activation, has_residual):
    if has_residual:
        x_ref, w_ref, b_ref, r_ref, o_ref, acc_ref = refs
    else:
        x_ref, w_ref, b_ref, o_ref, acc_ref = refs
        r_ref = None

    @pl.when(pl.program_id(2) == 0)
    def _():
        acc_ref[...] = jnp.zeros_like(acc_ref)

    acc_ref[...] += jnp.dot(x_ref[...], w_ref[...],
                            preferred_element_type=jnp.float32)

    @pl.when(pl.program_id(2) == pl.num_programs(2) - 1)
    def _():
        out = acc_ref[...] + b_ref[...]
        if activation == "gelu":
            out = _gelu_tanh(out)
        if r_ref is not None:
            out = out + r_ref[...].astype(jnp.float32)
        o_ref[...] = out.astype(o_ref.dtype)


def matmul_bias(x, w, b2d, *, residual=None, activation=None,
                out_dtype=jnp.bfloat16, tm_cap=512, tn_cap=512, tk_cap=1024):
    """x: [M, K] (any float), w: [K, N] bf16, b2d: [1, N] f32 -> [M, N].

    bf16 operands / f32 MXU accumulation; grid (M, N, K) with K "arbitrary";
    bias, optional GELU and optional residual fused into the K finalize.
    """
    M, K = x.shape
    Kw, N = w.shape
    assert K == Kw
    tm, Mp = _pick_tile(M, 16, tm_cap)
    tn, Np = _pick_tile(N, 128, tn_cap)
    tk, Kp = _pick_tile(K, 128, tk_cap)

    xp = _pad2(_bf16(x), Mp, Kp)
    wp = _pad2(_bf16(w), Kp, Np)
    bp = _pad2(b2d.astype(jnp.float32) if b2d.dtype != jnp.float32 else b2d, 1, Np)

    in_specs = [pl.BlockSpec((tm, tk), lambda i, j, k: (i, k)),
                pl.BlockSpec((tk, tn), lambda i, j, k: (k, j)),
                pl.BlockSpec((1, tn), lambda i, j, k: (0, j))]
    args = [xp, wp, bp]
    if residual is not None:
        rp = _pad2(_bf16(residual), Mp, Np)
        in_specs.append(pl.BlockSpec((tm, tn), lambda i, j, k: (i, j)))
        args.append(rp)

    kernel = functools.partial(_matmul_kernel, activation=activation,
                               has_residual=residual is not None)
    out = pl.pallas_call(
        kernel,
        out_shape=jax.ShapeDtypeStruct((Mp, Np), out_dtype),
        grid=(Mp // tm, Np // tn, Kp // tk),
        in_specs=in_specs,
        out_specs=pl.BlockSpec((tm, tn), lambda i, j, k: (i, j)),
        scratch_shapes=[pltpu.VMEM((tm, tn), jnp.float32)],
        compiler_params=pltpu.CompilerParams(
            dimension_semantics=("parallel", "parallel", "arbitrary"),
            vmem_limit_bytes=_VMEM_LIMIT),
    )(*args)
    if (Mp, Np) != (M, N):
        out = out[:M, :N]
    return out


# ------------------- fused LayerNorm + matmul (+ bias / gelu) ----------------

def _ln_matmul_kernel(x_ref, lnw_ref, lnb_ref, w_ref, b_ref, o_ref, *,
                      activation, eps):
    x = x_ref[...].astype(jnp.float32)
    mu = jnp.mean(x, axis=-1, keepdims=True)
    var = jnp.mean(jnp.square(x - mu), axis=-1, keepdims=True)
    h = (x - mu) * jax.lax.rsqrt(var + eps) * lnw_ref[...] + lnb_ref[...]
    out = jnp.dot(h.astype(jnp.bfloat16), w_ref[...],
                  preferred_element_type=jnp.float32)
    out = out + b_ref[...]
    if activation == "gelu":
        out = _gelu_tanh(out)
    o_ref[...] = out.astype(o_ref.dtype)


def ln_matmul_bias(x, lnw2d, lnb2d, w, b2d, *, activation=None,
                   out_dtype=jnp.bfloat16, eps=1e-5, tm_cap=512, tn_cap=512):
    """LayerNorm(x) @ w + b with the LN fused into the matmul kernel.

    x: [M, D] (bf16), lnw/lnb: [1, D] f32, w: [D, N] bf16, b: [1, N] f32.
    K (= D) is kept whole so LN sees full rows; grid is (M, N) only.
    """
    M, D = x.shape
    Dw, N = w.shape
    assert D == Dw
    tm, Mp = _pick_tile(M, 16, tm_cap)
    tn, Np = _pick_tile(N, 128, tn_cap)

    xp = _pad2(_bf16(x), Mp, D)
    wp = _pad2(_bf16(w), D, Np)
    bp = _pad2(b2d.astype(jnp.float32) if b2d.dtype != jnp.float32 else b2d, 1, Np)

    out = pl.pallas_call(
        functools.partial(_ln_matmul_kernel, activation=activation, eps=eps),
        out_shape=jax.ShapeDtypeStruct((Mp, Np), out_dtype),
        grid=(Mp // tm, Np // tn),
        in_specs=[pl.BlockSpec((tm, D), lambda i, j: (i, 0)),
                  pl.BlockSpec((1, D), lambda i, j: (0, 0)),
                  pl.BlockSpec((1, D), lambda i, j: (0, 0)),
                  pl.BlockSpec((D, tn), lambda i, j: (0, j)),
                  pl.BlockSpec((1, tn), lambda i, j: (0, j))],
        out_specs=pl.BlockSpec((tm, tn), lambda i, j: (i, j)),
        compiler_params=pltpu.CompilerParams(
            dimension_semantics=("parallel", "parallel"),
            vmem_limit_bytes=_VMEM_LIMIT),
    )(xp, lnw2d, lnb2d, wp, bp)
    if (Mp, Np) != (M, N):
        out = out[:M, :N]
    return out


# ------------------- flash attention over packed qkv -------------------------

def _flash_attn_kernel(qkv_q_ref, qkv_kv_ref, o_ref, m_sc, l_sc, acc_sc, *,
                       num_heads, head_dim, seq_len, kv_tile, scale):
    kvi = pl.program_id(2)
    D = num_heads * head_dim

    @pl.when(kvi == 0)
    def _():
        m_sc[...] = jnp.full_like(m_sc, -jnp.inf)
        l_sc[...] = jnp.zeros_like(l_sc)
        acc_sc[...] = jnp.zeros_like(acc_sc)

    q_all = qkv_q_ref[0]                                   # [tq, 3D] bf16
    kv_all = qkv_kv_ref[0]                                 # [tkv, 3D] bf16

    # additive mask for padded key positions (seq_len is static)
    kv_pos = kvi * kv_tile + jax.lax.broadcasted_iota(jnp.int32, (1, kv_tile), 1)
    neg = jnp.where(kv_pos < seq_len, 0.0, -1e30).astype(jnp.float32)  # [1, tkv]

    for h in range(num_heads):
        sl = slice(h * head_dim, (h + 1) * head_dim)
        qh = (q_all[:, sl] * scale).astype(jnp.bfloat16)   # scale folded into q
        kh = kv_all[:, D:2 * D][:, sl]
        vh = kv_all[:, 2 * D:3 * D][:, sl]

        s = jax.lax.dot_general(qh, kh, (((1,), (1,)), ((), ())),
                                preferred_element_type=jnp.float32)   # [tq, tkv]
        s = s + neg

        m_prev = m_sc[:, h:h + 1]                          # [tq, 1]
        m_new = jnp.maximum(m_prev, jnp.max(s, axis=-1, keepdims=True))
        alpha = jnp.exp(m_prev - m_new)
        p = jnp.exp(s - m_new)
        l_sc[:, h:h + 1] = alpha * l_sc[:, h:h + 1] + jnp.sum(p, axis=-1,
                                                              keepdims=True)
        acc_sc[:, sl] = alpha * acc_sc[:, sl] + jax.lax.dot_general(
            p.astype(jnp.bfloat16), vh, (((1,), (0,)), ((), ())),
            preferred_element_type=jnp.float32)
        m_sc[:, h:h + 1] = m_new

    @pl.when(kvi == pl.num_programs(2) - 1)
    def _():
        for h in range(num_heads):
            sl = slice(h * head_dim, (h + 1) * head_dim)
            inv = pl.reciprocal(l_sc[:, h:h + 1], approx=True)
            acc_sc[:, sl] = acc_sc[:, sl] * inv
        o_ref[0] = acc_sc[...].astype(o_ref.dtype)         # lane-dense [tq, D]


def flash_attention(qkv, *, num_heads, seq_len, scale,
                    tq_cap=256, tkv_cap=256, out_dtype=jnp.bfloat16):
    """qkv: [B, Sp, 3D] bf16 (Sp may include padded rows) -> [B, Sp, D].

    Flash-style online softmax; KV axis is the accumulation ("arbitrary") axis
    so the S x S score tensor is never materialized; padded key positions
    (index >= seq_len) are masked.
    """
    B, Sp, threeD = qkv.shape
    D = threeD // 3
    dh = D // num_heads
    tq, _ = _pick_tile(Sp, 8, tq_cap)
    tkv, _ = _pick_tile(Sp, 8, tkv_cap)

    kernel = functools.partial(_flash_attn_kernel, num_heads=num_heads,
                               head_dim=dh, seq_len=seq_len, kv_tile=tkv,
                               scale=scale)
    return pl.pallas_call(
        kernel,
        out_shape=jax.ShapeDtypeStruct((B, Sp, D), out_dtype),
        grid=(B, Sp // tq, Sp // tkv),
        in_specs=[pl.BlockSpec((1, tq, threeD), lambda b, qi, ki: (b, qi, 0)),
                  pl.BlockSpec((1, tkv, threeD), lambda b, qi, ki: (b, ki, 0))],
        out_specs=pl.BlockSpec((1, tq, D), lambda b, qi, ki: (b, qi, 0)),
        scratch_shapes=[pltpu.VMEM((tq, num_heads), jnp.float32),
                        pltpu.VMEM((tq, num_heads), jnp.float32),
                        pltpu.VMEM((tq, D), jnp.float32)],
        compiler_params=pltpu.CompilerParams(
            dimension_semantics=("parallel", "parallel", "arbitrary"),
            vmem_limit_bytes=_VMEM_LIMIT),
    )(qkv, qkv)


# --------------------------- transformer block --------------------------------

def transformer_block(x, p, num_heads, seq_len):
    """Pre-norm ViT block: x + proj(MHA(LN(x))); x + MLP(LN(x)).  x: [B, Sp, D] bf16."""
    B, Sp, D = x.shape
    dh = D // num_heads
    scale = 1.0 / math.sqrt(dh)
    xf = x.reshape(B * Sp, D)

    # --- multi-head self attention (LN fused into the qkv matmul) ---
    qkv = ln_matmul_bias(xf, p["ln1_w"], p["ln1_b"], p["qkv_w"], p["qkv_b"],
                         out_dtype=jnp.bfloat16)                     # [B*Sp, 3D]
    attn = flash_attention(qkv.reshape(B, Sp, 3 * D), num_heads=num_heads,
                           seq_len=seq_len, scale=scale)             # [B, Sp, D]
    x1 = matmul_bias(attn.reshape(B * Sp, D), p["proj_w"], p["proj_b"],
                     residual=xf, out_dtype=jnp.bfloat16)

    # --- MLP (LN fused into the fc1 matmul) ---
    h = ln_matmul_bias(x1, p["ln2_w"], p["ln2_b"], p["fc1_w"], p["fc1_b"],
                       activation="gelu", out_dtype=jnp.bfloat16)
    x2 = matmul_bias(h, p["fc2_w"], p["fc2_b"], residual=x1,
                     out_dtype=jnp.bfloat16)
    return x2.reshape(B, Sp, D)


# ------------------------------- JAX glue -----------------------------------

def im2col(x, k, s):
    """nn.Unfold(kernel=k, stride=s), non-overlapping (k == s). NCHW -> [B, N, C*k*k]."""
    B, C, H, W = x.shape
    assert k == s and H % k == 0 and W % k == 0
    x = x.reshape(B, C, H // k, k, W // k, k)
    x = x.transpose(0, 2, 4, 1, 3, 5)                       # [B, Hp, Wp, C, k, k]
    return x.reshape(B, (H // k) * (W // k), C * k * k)


def batch_patch_partial_shuffle(patch_token, k1, k2, key):
    """Shuffle round(k2*N) patch positions of round(k1*B) samples (single gather)."""
    B, N, _ = patch_token.shape
    n_samples = int(round(B * k1))
    n_patches = int(round(N * k2))
    if n_samples == 0 or n_patches <= 1:
        return patch_token

    def sample_idx(k):
        pos = jax.random.permutation(k, N)[:n_patches]
        perm = jax.random.permutation(jax.random.fold_in(k, 1), n_patches)
        return jnp.arange(N).at[pos].set(pos[perm])

    keys = jax.random.split(key, n_samples)
    idx_sh = jax.vmap(sample_idx)(keys)                              # [ns, N]
    idx_id = jnp.broadcast_to(jnp.arange(N), (B - n_samples, N))
    idx = jnp.concatenate([idx_sh, idx_id], axis=0)                  # [B, N]
    return jnp.take_along_axis(patch_token, idx[:, :, None], axis=1)


def init_params(key, in_chans, patch, embed_dim, depth, num_heads, mlp_ratio,
                num_classes):
    keys = jax.random.split(key, 8 + depth)
    ki = iter(keys)

    def w(k, shape):
        # matmul weights are pre-cast to bf16 once here (MXU inputs); LN params
        # and biases stay f32
        return (0.02 * jax.random.normal(k, shape, jnp.float32)).astype(jnp.bfloat16)

    Cp = in_chans * patch * patch
    Hm = embed_dim * mlp_ratio
    params = {
        "patch_w": w(next(ki), (Cp, embed_dim)),
        "patch_b": jnp.zeros((1, embed_dim), jnp.float32),
        "cls_token": 0.02 * jax.random.normal(next(ki), (1, 1, embed_dim), jnp.float32),
        "norm_w": jnp.ones((1, embed_dim), jnp.float32),
        "norm_b": jnp.zeros((1, embed_dim), jnp.float32),
        "head_w": w(next(ki), (embed_dim, num_classes)),
        "head_b": jnp.zeros((1, num_classes), jnp.float32),
        "blocks": [],
    }
    for _ in range(depth):
        kb = jax.random.split(next(ki), 4)
        params["blocks"].append({
            "ln1_w": jnp.ones((1, embed_dim), jnp.float32),
            "ln1_b": jnp.zeros((1, embed_dim), jnp.float32),
            "qkv_w": w(kb[0], (embed_dim, 3 * embed_dim)),
            "qkv_b": jnp.zeros((1, 3 * embed_dim), jnp.float32),
            "proj_w": w(kb[1], (embed_dim, embed_dim)),
            "proj_b": jnp.zeros((1, embed_dim), jnp.float32),
            "ln2_w": jnp.ones((1, embed_dim), jnp.float32),
            "ln2_b": jnp.zeros((1, embed_dim), jnp.float32),
            "fc1_w": w(kb[2], (embed_dim, Hm)),
            "fc1_b": jnp.zeros((1, Hm), jnp.float32),
            "fc2_w": w(kb[3], (Hm, embed_dim)),
            "fc2_b": jnp.zeros((1, embed_dim), jnp.float32),
        })
    return params


def t2t_pretrain_forward(params, x, *, cut_layer, k1, k2, num_heads, patch,
                         shuffle_key):
    B = x.shape[0]
    D = params["patch_w"].shape[1]

    # tokens_to_token: soft split (unfold) + linear projection (Pallas matmul)
    cols = im2col(x, patch, patch)                          # [B, N, C*p*p] f32
    _, N, Cp = cols.shape
    tok = matmul_bias(cols.reshape(B * N, Cp), params["patch_w"],
                      params["patch_b"], out_dtype=jnp.bfloat16).reshape(B, N, D)

    # shuffle patch tokens (cls stays at position 0), prepend cls token
    tok = batch_patch_partial_shuffle(tok, k1, k2, shuffle_key)
    cls = jnp.broadcast_to(params["cls_token"].astype(jnp.bfloat16), (B, 1, D))
    xt = jnp.concatenate([cls, tok], axis=1)                # [B, S, D] bf16

    # pad the sequence once to a sublane multiple; padded keys are masked in
    # attention and padded rows never reach the classifier
    S = xt.shape[1]
    Sp = _rup(S, 8)
    if Sp != S:
        xt = jnp.pad(xt, ((0, 0), (0, Sp - S), (0, 0)))

    # blocks[:cut_layer] then blocks[cut_layer:]
    for blk in params["blocks"][:cut_layer]:
        xt = transformer_block(xt, blk, num_heads, seq_len=S)
    for blk in params["blocks"][cut_layer:]:
        xt = transformer_block(xt, blk, num_heads, seq_len=S)

    # final LayerNorm is fused into the classification-head matmul and applied
    # only to the cls rows (LN is row-wise, so norm(x)[:,0] == norm(x[:,0]))
    cls_out = xt[:, 0, :]                                   # [B, D] bf16
    logits = ln_matmul_bias(cls_out, params["norm_w"], params["norm_b"],
                            params["head_w"], params["head_b"],
                            out_dtype=jnp.float32)
    return logits


# --------------------------------- main --------------------------------------

if __name__ == "__main__":
    B, C, H, W = 2, 4, 16, 16
    patch = 4            # soft-split kernel == stride
    embed_dim = 32
    depth = 2
    cut_layer = 1
    num_heads = 4
    mlp_ratio = 4
    num_classes = 10
    k1, k2 = 1, 1

    root = jax.random.PRNGKey(0)
    kx, kp, ks = jax.random.split(root, 3)
    x = jax.random.normal(kx, (B, C, H, W), jnp.float32)
    params = init_params(kp, C, patch, embed_dim, depth, num_heads, mlp_ratio,
                         num_classes)

    logits = t2t_pretrain_forward(params, x, cut_layer=cut_layer, k1=k1, k2=k2,
                                  num_heads=num_heads, patch=patch,
                                  shuffle_key=ks)
    jax.block_until_ready(logits)
    assert logits.shape == (B, num_classes) and logits.dtype == jnp.float32
    assert bool(jnp.all(jnp.isfinite(logits)))
    print("KERNEL_OK")
</pallas_src>

<mosaic_0001>
module attributes {stable_mosaic.version = 11 : i64} {
  func.func @_matmul_kernel(%arg0: i32, %arg1: i32, %arg2: i32, %arg3: memref<32x64xbf16, #tpu.memory_space<vmem>>, %arg4: memref<64x32xbf16, #tpu.memory_space<vmem>>, %arg5: memref<1x32xf32, #tpu.memory_space<vmem>>, %arg6: memref<32x32xbf16, #tpu.memory_space<vmem>>, %arg7: memref<32x32xf32, #tpu.memory_space<vmem>>) attributes {dimension_semantics = [#tpu.dimension_semantics<parallel>, #tpu.dimension_semantics<parallel>, #tpu.dimension_semantics<arbitrary>], iteration_bounds = array<i64: 1, 1, 1>, scalar_prefetch = 0 : i64, scratch_operands = 1 : i64, tpu.core_type = #tpu.core_type<tc>, window_params = [{transform_indices = @transform_0, window_bounds = array<i64: 32, 64>}, {transform_indices = @transform_1, window_bounds = array<i64: 64, 32>}, {transform_indices = @transform_2, window_bounds = array<i64: 1, 32>}, {transform_indices = @transform_3, window_bounds = array<i64: 32, 32>}]} {
    %c0_i32 = arith.constant 0 : i32
    %0 = arith.cmpi eq, %arg2, %c0_i32 : i32
    %1 = arith.extui %0 : i1 to i32
    %c0_i32_0 = arith.constant 0 : i32
    %2 = arith.cmpi ne, %1, %c0_i32_0 : i32
    scf.if %2 {
      %cst_10 = arith.constant 0.000000e+00 : f32
      %12 = vector.broadcast %cst_10 : f32 to vector<32x32xf32>
      %c0_11 = arith.constant 0 : index
      %c0_12 = arith.constant 0 : index
      %13 = vector.load %arg7[%c0_11, %c0_12] : memref<32x32xf32, #tpu.memory_space<vmem>>, vector<32x32xf32>
      tpu.vector_store %arg7[%c0_11, %c0_12], %12 {strides = array<i32>} : memref<32x32xf32, #tpu.memory_space<vmem>>, vector<32x32xf32>,
    } else {
    }
    %c0 = arith.constant 0 : index
    %c0_1 = arith.constant 0 : index
    %3 = vector.load %arg7[%c0, %c0_1] : memref<32x32xf32, #tpu.memory_space<vmem>>, vector<32x32xf32>
    %c0_2 = arith.constant 0 : index
    %c0_3 = arith.constant 0 : index
    %4 = vector.load %arg3[%c0_2, %c0_3] : memref<32x64xbf16, #tpu.memory_space<vmem>>, vector<32x64xbf16>
    %c0_4 = arith.constant 0 : index
    %c0_5 = arith.constant 0 : index
    %5 = vector.load %arg4[%c0_4, %c0_5] : memref<64x32xbf16, #tpu.memory_space<vmem>>, vector<64x32xbf16>
    %cst = arith.constant dense<0.000000e+00> : vector<32x32xf32>
    %6 = tpu.matmul %4, %5, %cst {dimension_numbers = #tpu.dot_dimension_numbers<[1], [0], [0], [1], [0, 0, 1, 1], [], []>} : vector<32x64xbf16>, vector<64x32xbf16>, vector<32x32xf32> -> vector<32x32xf32>
    %7 = arith.addf %3, %6 : vector<32x32xf32>
    %c0_6 = arith.constant 0 : index
    %c0_7 = arith.constant 0 : index
    %8 = vector.load %arg7[%c0_6, %c0_7] : memref<32x32xf32, #tpu.memory_space<vmem>>, vector<32x32xf32>
    tpu.vector_store %arg7[%c0_6, %c0_7], %7 {strides = array<i32>} : memref<32x32xf32, #tpu.memory_space<vmem>>, vector<32x32xf32>,
    %c0_i32_8 = arith.constant 0 : i32
    %9 = arith.cmpi eq, %arg2, %c0_i32_8 : i32
    %10 = arith.extui %9 : i1 to i32
    %c0_i32_9 = arith.constant 0 : i32
    %11 = arith.cmpi ne, %10, %c0_i32_9 : i32
    scf.if %11 {
      %c0_10 = arith.constant 0 : index
      %c0_11 = arith.constant 0 : index
      %12 = vector.load %arg7[%c0_10, %c0_11] : memref<32x32xf32, #tpu.memory_space<vmem>>, vector<32x32xf32>
      %c0_12 = arith.constant 0 : index
      %c0_13 = arith.constant 0 : index
      %13 = vector.load %arg5[%c0_12, %c0_13] : memref<1x32xf32, #tpu.memory_space<vmem>>, vector<1x32xf32>
      %14 = vector.broadcast %13 : vector<1x32xf32> to vector<32x32xf32>
      %15 = arith.addf %12, %14 : vector<32x32xf32>
      %16 = arith.truncf %15 : vector<32x32xf32> to vector<32x32xbf16>
      %c0_14 = arith.constant 0 : index
      %c0_15 = arith.constant 0 : index
      %17 = vector.load %arg6[%c0_14, %c0_15] : memref<32x32xbf16, #tpu.memory_space<vmem>>, vector<32x32xbf16>
      tpu.vector_store %arg6[%c0_14, %c0_15], %16 {strides = array<i32>} : memref<32x32xbf16, #tpu.memory_space<vmem>>, vector<32x32xbf16>,
    } else {
    }
    return
  }
  func.func @transform_0(%arg0: i32, %arg1: i32, %arg2: i32) -> (i32, i32) {
    %c0_i32 = arith.constant 0 : i32
    return %arg0, %arg2 : i32, i32
  }
  func.func @transform_1(%arg0: i32, %arg1: i32, %arg2: i32) -> (i32, i32) {
    %c0_i32 = arith.constant 0 : i32
    return %arg2, %arg1 : i32, i32
  }
  func.func @transform_2(%arg0: i32, %arg1: i32, %arg2: i32) -> (i32, i32) {
    %c0_i32 = arith.constant 0 : i32
    %c0_i32_0 = arith.constant 0 : i32
    return %c0_i32, %arg1 : i32, i32
  }
  func.func @transform_3(%arg0: i32, %arg1: i32, %arg2: i32) -> (i32, i32) {
    %c0_i32 = arith.constant 0 : i32
    return %arg0, %arg1 : i32, i32
  }
}

</mosaic_0001>

<bundles_post_ra>
// kernel: tpu_custom_call.1
= control target key start
LH: loop header
LB: loop body
LE: loop exit
PB: predicated region body
PF: predicated region fallthrough
CT: control target
= control target key end

     0   :  { %vm20_vm0 = vcmask 261120   ;;  %vm75_vm1 = vcmask 523264   ;;  %v264_v3 = vmov 0.0   ;;  %s331_s0 = inlined_call_operand.vmem [shape: bf16[32,64], index: 0, kind: input, shape index: {}]   ;;  %s332_s1 = inlined_call_operand.vmem [shape: bf16[64,32], index: 1, kind: input, shape index: {}]   ;;  %s333_s2 = inlined_call_operand.vmem [shape: f32[1,32], index: 2, kind: input, shape index: {}]   ;;  %s334_s3 = inlined_call_operand.hbm [shape: bf16[32,32], index: 3, kind: output, shape index: {}]  }
   0x1   :  { %v234_v0 = vld [vmem:[%s332_s1] sm:$0xff]   ;;  %v235_v1 = vld [vmem:[%s332_s1 + $0x8] sm:$0xff]   ;;  %v236_v2 = vld [vmem:[%s332_s1 + $0x10] sm:$0xff]   ;;  %23 = vst.msk [vmem:[#allocation2 + $0x10] sm:$0xff] %vm20_vm0, %v264_v3 }
   0x2   :  { %218 = vmatprep.subr.bf16.mxu0 %v234_v0  ;;  %21 = vst.msk [vmem:[#allocation2] sm:$0xff] %vm20_vm0, %v264_v3  ;;  %22 = vst.msk [vmem:[#allocation2 + $0x8] sm:$0xff] %vm20_vm0, %v264_v3  ;;  %v238_v4 = vld [vmem:[%s331_s0] sm:$0xff]  }
   0x3   :  { %219 = vmatpush3.bf16.msra.mxu0 %v234_v0  ;;  %24 = vst.msk [vmem:[#allocation2 + $0x18] sm:$0xff] %vm20_vm0, %v264_v3  ;;  %226 = vmatprep.mubr.msk.bf16.mxu0 %vm75_vm1, %v238_v4 }
   0x4   :  { %220 = vmatprep.subr.bf16.mxu0 %v235_v1 }
   0x5   :  { %8 = vsyncpa [#allocation4], 0  ;;  %v237_v5 = vld [vmem:[%s332_s1 + $0x18] sm:$0xff]   ;;  %v239_v6 = vld [vmem:[%s331_s0 + $0x8] sm:$0xff]   ;;  %vm174_vm2 = vcmask 257024   ;;  %s265_s24 = smov [#allocation3]  }
   0x6   :  { %v203_v19 = vld [vmem:[%s333_s2] ss:$0 sm:$0xff]  ;;  %s184_s25 = sshll.u32 %s265_s24, 4  ;;  %s185_s25 = int_to_ptr.vmem [resolvable:$true] %s184_s25 }
   0x7   :  { %221 = vmatpush3.bf16.msra.mxu0 %v235_v1  ;;  %s240_s2 = scalar_lea.vmem %s185_s25, 256  ;;  %p245_p1 = scmp.lt.s32.totalorder %s185_s25, %s185_s25 }
   0x8   :  { %222 = vmatprep.subr.bf16.mxu0 %v236_v2  ;;  %v27_v7 = vld [vmem:[#allocation2 + $0x10] sm:$0xff]  ;;  %p241_p0 = scmp.ne.s32.totalorder %s185_s25, %s240_s2  ;;  %p246_p2 = scmp.lt.s32.totalorder %s240_s2, %s240_s2 }
   0x9   :  { %v25_v8 = vld [vmem:[#allocation2] sm:$0xff]  ;;  %v26_v13 = vld [vmem:[#allocation2 + $0x8] sm:$0xff] }
   0xa   :  { %v28_v10 = vld [vmem:[#allocation2 + $0x18] sm:$0xff]  ;;  %p247_p3 = por %p246_p2, %p245_p1 }
   0xb   :  { %223 = vmatpush3.bf16.msra.mxu0 %v236_v2 }
   0xc   :  { %224 = vmatprep.subr.bf16.mxu0 %v237_v5  ;;  %p248_p4 = pnand %p247_p3, %p241_p0 }
   0xf   :  { %225 = vmatpush3.bf16.msra.mxu0 %v237_v5 }
  0x12   :  { %227 = vmatmul.mubr.msk.bf16.vlgmr.msra.gmra.mrb[0].mxu0 %vm75_vm1, %v239_v6 }
  0xe5   :  { %v228_v9 = vpop.f32.mrb[0].mxu0 }
  0xe6   :  { %v133_v11 = vadd.f32 %v228_v9, %v27_v7  ;;  %v116_v12 = vpop.f32.mrb[1].mxu0 }
  0xe7   :  { %v131_v14 = vadd.f32 %v116_v12, %v25_v8  ;;  %v229_v15 = vpop.f32.mrb[2].mxu0 }
  0xe8   :  { %138 = vst.msk [vmem:[#allocation2 + $0x10] sm:$0xff] %vm20_vm0, %v133_v11  ;;  %v134_v16 = vadd.f32 %v229_v15, %v28_v10  ;;  %v119_v17 = vpop.f32.mrb[3].mxu0 }
  0xe9   :  { %136 = vst.msk [vmem:[#allocation2] sm:$0xff] %vm20_vm0, %v131_v14  ;;  %v132_v18 = vadd.f32 %v119_v17, %v26_v13 }
  0xea   :  { %139 = vst.msk [vmem:[#allocation2 + $0x18] sm:$0xff] %vm20_vm0, %v134_v16 }
  0xeb   :  { %137 = vst.msk [vmem:[#allocation2 + $0x8] sm:$0xff] %vm20_vm0, %v132_v18 }
  0xef   :  { %v145_v20 = vld [vmem:[#allocation2 + $0x10] sm:$0xff] }
  0xf0   :  { %v143_v21 = vld [vmem:[#allocation2] sm:$0xff]  ;;  %v156_v22 = vadd.f32 %v203_v19, %v145_v20 }
  0xf1   :  { %v146_v23 = vld [vmem:[#allocation2 + $0x18] sm:$0xff]  ;;  %v154_v24 = vadd.f32 %v203_v19, %v143_v21 }
  0xf2   :  { %v144_v25 = vld [vmem:[#allocation2 + $0x8] sm:$0xff]  ;;  %v157_v26 = vadd.f32 %v203_v19, %v146_v23  ;;  %v210_v27 = vpack.c.bf16 %v156_v22, %v156_v22 }
  0xf3   :  { %v155_v28 = vadd.f32 %v203_v19, %v144_v25  ;;  %v208_v29 = vpack.c.bf16 %v154_v24, %v154_v24 }
  0xf4   :  { %v211_v30 = vpack.c.bf16 %v157_v26, %v157_v26  ;;  %177 = vst.msk [vmem:[#allocation3 + $0x8] sm:$0xf] %vm174_vm2, %v210_v27 }
  0xf5   :  { %v209_v31 = vpack.c.bf16 %v155_v28, %v155_v28  ;;  %175 = vst.msk [vmem:[#allocation3] sm:$0xf] %vm174_vm2, %v208_v29 }
  0xf6   :  { %178 = vst.msk [vmem:[#allocation3 + $0xc] sm:$0xf] %vm174_vm2, %v211_v30 }
  0xf7   :  { %176 = vst.msk [vmem:[#allocation3 + $0x4] sm:$0xf] %vm174_vm2, %v209_v31 }
  0xf8   :  { %251 = shalt.err (!%p248_p4)
}
  0xf9   :  { %s252_s28 = scalar_lea.hbm %s334_s3, 256 }
  0xfa   :  { %p253_p5 = scmp.ne.s32.totalorder %s334_s3, %s252_s28  ;;  %p256_p6 = scmp.lt.u32.totalorder %s252_s28, %s334_s3 }
  0xfc   :  { %p258_p7 = pnand %p256_p6, %p253_p5 }
  0xfe   :  { %261 = shalt.err (!%p258_p7)
}
  0xff   :  { %s266_s6 = smov 64   ;;  %s267_s7 = smov 4  }
 0x100   :  { %190 = dma.vmem_to_hbm [thread:$0]  %s185_s25, 256, %s334_s3, [#allocation4], %s266_s6, %s266_s6, %s267_s7  }
 0x101   :  { %262 = dma.done.wait [#allocation4], 256  }
 0x102   :  { %263 = vsyncadd [#allocation4], 4294967040 }
 0x103   :  { %194 = vsyncpa [#allocation4], 1 }

</bundles_post_ra>
